<compile_context>
chip_gen: v7x
topology: tpu7x:2x2x1
jax: 0.10.0
libtpu: 0.0.40
codegen_flags: <defaults>
</compile_context>

<pallas_src>
import functools

import jax
import jax.numpy as jnp
from jax import lax
from jax.experimental import pallas as pl
from jax.experimental.pallas import tpu as pltpu

EPS = 1e-5


# --------------------------------------------------------------------------- kernel
def _resblock_kernel(C, x_ref, t1_ref, t2_ref, bng_ref, bnb_ref,
                     lng_ref, lnb_ref, b2_ref, out_ref):
    N, H, WC = x_ref.shape
    NH = N * H
    W = WC // C

    x = x_ref[...]                                           # (N, H, WC) f32

    # Per-channel pooling across the W lane-groups sharing a channel: log2(W)
    # lane-roll butterfly (XLU).  Result is already broadcast to every (w, c) lane.
    def channel_pool(col):                                   # (1, WC) -> (1, 1, WC)
        sh = C
        while sh < WC:
            col = col + pltpu.roll(col, sh, 1)
            sh *= 2
        return col.reshape(1, 1, WC)

    # 3x3 conv, pad=1, stride=1, as a single MXU matmul against a Toeplitz weight.
    def conv3x3(v, t_ref):                                   # v: (N, H, WC) f32
        zrow = jnp.zeros((N, 1, WC), jnp.float32)
        up = jnp.concatenate([zrow, v[:, :H - 1, :]], axis=1)   # row h-1 (zero @ h=0)
        dn = jnp.concatenate([v[:, 1:, :], zrow], axis=1)       # row h+1 (zero @ h=H-1)
        op = jnp.concatenate([up, v, dn], axis=2)               # (N, H, 3*WC)
        op2 = op.reshape(NH, 3 * WC).astype(jnp.bfloat16)
        r = jnp.dot(op2, t_ref[...], preferred_element_type=jnp.float32)  # (NH, WC)
        return r.reshape(N, H, WC)

    # -------- BatchNorm2d (training-mode batch stats over N,H,W), single pass + ReLU
    s1 = channel_pool(jnp.sum(jnp.sum(x, axis=0), axis=0, keepdims=True))
    s2 = channel_pool(jnp.sum(jnp.sum(x * x, axis=0), axis=0, keepdims=True))
    inv_bn = 1.0 / (N * H * W)
    mean = s1 * inv_bn
    var = s2 * inv_bn - mean * mean                          # biased variance
    y = (x - mean) * lax.rsqrt(var + EPS) * bng_ref[...] + bnb_ref[...]
    y = jnp.maximum(y, 0.0)

    # -------- conv_1 (no bias)
    z = conv3x3(y, t1_ref)

    # -------- LayerNorm over (C,H,W) per sample, single pass + ReLU
    u1 = jnp.sum(jnp.sum(z, axis=2, keepdims=True), axis=1, keepdims=True)      # (N,1,1)
    u2 = jnp.sum(jnp.sum(z * z, axis=2, keepdims=True), axis=1, keepdims=True)
    inv_ln = 1.0 / (H * WC)
    mu = u1 * inv_ln
    var2 = u2 * inv_ln - mu * mu
    zn = (z - mu) * lax.rsqrt(var2 + EPS) * lng_ref[...] + lnb_ref[...]
    zn = jnp.maximum(zn, 0.0)

    # -------- conv_2 (bias) + residual (shortcut = input: Cin==Cout, downsample=None)
    o = conv3x3(zn, t2_ref) + b2_ref[...]
    out_ref[...] = x + o


# ----------------------------------------------------------------------- wrapper
def _toeplitz_weight(w_hwio, W):
    """(KH,KW,Cin,Cout) HWIO -> (KH*W*Cin, W*Cout) block-banded matrix T so that
    out_row(h) [flattened (W,Cout)] = concat(rows h-1,h,h+1 flattened (W,Cin)) @ T,
    which equals a KHxKW conv with padding (KW-1)//2 along W (cross-correlation)."""
    KH, KW, Cin, Cout = w_hwio.shape
    w_in = jnp.arange(W)[:, None]                 # (W, 1)
    w_out = jnp.arange(W)[None, :]                # (1, W)
    kw = w_in - w_out + (KW // 2)                 # (W, W)
    valid = (kw >= 0) & (kw < KW)
    kw_c = jnp.clip(kw, 0, KW - 1)
    t = w_hwio[:, kw_c, :, :]                     # (KH, W_in, W_out, Cin, Cout)
    t = jnp.where(valid[None, :, :, None, None], t, 0.0)
    t = jnp.transpose(t, (0, 1, 3, 2, 4))         # (KH, W_in, Cin, W_out, Cout)
    return t.reshape(KH * W * Cin, W * Cout)


def _full_spec(shape):
    nd = len(shape)
    return pl.BlockSpec(shape, lambda i, _nd=nd: (0,) * _nd)


def resblock_forward_nhwc(x_nhwc, w1_hwio, w2_hwio, b2, bn_g, bn_b, ln_g_chw, ln_b_chw):
    """ResBlock forward, channels-last.  x_nhwc: (N,H,W,C) f32 -> (N,H,W,C) f32."""
    N, H, W, C = x_nhwc.shape
    assert W > 0 and (W & (W - 1)) == 0, "W must be a power of two (lane butterfly)"
    assert w1_hwio.shape == (3, 3, C, C) and w2_hwio.shape == (3, 3, C, C), \
        "kernel implements the Cin == Cout, kernel_size=3 configuration"
    WC = W * C

    x = x_nhwc.astype(jnp.float32).reshape(N, H, WC)
    t1 = _toeplitz_weight(w1_hwio.astype(jnp.float32), W).astype(jnp.bfloat16)
    t2 = _toeplitz_weight(w2_hwio.astype(jnp.float32), W).astype(jnp.bfloat16)
    bng = jnp.tile(bn_g.astype(jnp.float32), W).reshape(1, 1, WC)
    bnb = jnp.tile(bn_b.astype(jnp.float32), W).reshape(1, 1, WC)
    b2t = jnp.tile(b2.astype(jnp.float32), W).reshape(1, 1, WC)
    lng = jnp.transpose(ln_g_chw.astype(jnp.float32), (1, 2, 0)).reshape(1, H, WC)
    lnb = jnp.transpose(ln_b_chw.astype(jnp.float32), (1, 2, 0)).reshape(1, H, WC)

    out = pl.pallas_call(
        functools.partial(_resblock_kernel, C),
        out_shape=jax.ShapeDtypeStruct((N, H, WC), jnp.float32),
        grid_spec=pltpu.PrefetchScalarGridSpec(
            num_scalar_prefetch=0,
            grid=(1,),
            in_specs=[
                _full_spec((N, H, WC)),        # x (fused lane layout)
                _full_spec((3 * WC, WC)),      # conv_1 Toeplitz weight (bf16)
                _full_spec((3 * WC, WC)),      # conv_2 Toeplitz weight (bf16)
                _full_spec((1, 1, WC)),        # BN gamma (tiled over w)
                _full_spec((1, 1, WC)),        # BN beta
                _full_spec((1, H, WC)),        # LN gamma (h, w*C+c)
                _full_spec((1, H, WC)),        # LN beta
                _full_spec((1, 1, WC)),        # conv_2 bias (tiled over w)
            ],
            out_specs=_full_spec((N, H, WC)),
        ),
        compiler_params=pltpu.CompilerParams(dimension_semantics=("arbitrary",)),
    )(x, t1, t2, bng, bnb, lng, lnb, b2t)

    return out.reshape(N, H, W, C)


@jax.jit
def resblock_forward(x_nchw, w1_hwio, w2_hwio, b2, bn_g, bn_b, ln_g_chw, ln_b_chw):
    """NCHW boundary adapter (parity with the PyTorch module).  The kernel path is
    channels-last; in an NHWC model these two transposes disappear entirely."""
    x_nhwc = jnp.transpose(x_nchw, (0, 2, 3, 1))
    out_nhwc = resblock_forward_nhwc(x_nhwc, w1_hwio, w2_hwio, b2,
                                     bn_g, bn_b, ln_g_chw, ln_b_chw)
    return jnp.transpose(out_nhwc, (0, 3, 1, 2))


# ------------------------- pure-JAX reference (NCHW, matches PyTorch) -------------
def resblock_reference(x, w1_hwio, w2_hwio, b2, bn_g, bn_b, ln_g_chw, ln_b_chw):
    # BatchNorm2d training-mode
    mean = jnp.mean(x, axis=(0, 2, 3), keepdims=True)
    var = jnp.mean((x - mean) ** 2, axis=(0, 2, 3), keepdims=True)
    y = (x - mean) / jnp.sqrt(var + EPS)
    y = y * bn_g.reshape(1, -1, 1, 1) + bn_b.reshape(1, -1, 1, 1)
    y = jnp.maximum(y, 0.0)
    # conv_1 (no bias)
    w1_oihw = jnp.transpose(w1_hwio, (3, 2, 0, 1))
    z = lax.conv_general_dilated(y, w1_oihw, (1, 1), ((1, 1), (1, 1)),
                                 dimension_numbers=("NCHW", "OIHW", "NCHW"),
                                 precision=lax.Precision.HIGHEST)
    # LayerNorm over (C,H,W)
    mu = jnp.mean(z, axis=(1, 2, 3), keepdims=True)
    var2 = jnp.mean((z - mu) ** 2, axis=(1, 2, 3), keepdims=True)
    zn = (z - mu) / jnp.sqrt(var2 + EPS)
    zn = zn * ln_g_chw[None] + ln_b_chw[None]
    zn = jnp.maximum(zn, 0.0)
    # conv_2 (bias)
    w2_oihw = jnp.transpose(w2_hwio, (3, 2, 0, 1))
    o = lax.conv_general_dilated(zn, w2_oihw, (1, 1), ((1, 1), (1, 1)),
                                 dimension_numbers=("NCHW", "OIHW", "NCHW"),
                                 precision=lax.Precision.HIGHEST)
    o = o + b2.reshape(1, -1, 1, 1)
    return x + o


if __name__ == "__main__":
    N, C, H, W = 2, 8, 16, 16          # W*C = 128 -> lane-dense fused layout
    key = jax.random.PRNGKey(0)
    kx, kw1, kw2, kb2, kg1, kb1, kg2, kb2l = jax.random.split(key, 8)

    x_nchw = jax.random.normal(kx, (N, C, H, W), jnp.float32)
    # Parameters (shapes from ResBlock.__init__ with in_channels=out_channels=C,
    # kernel_size=3, downsample=None, hw=H).
    w1 = jax.random.normal(kw1, (3, 3, C, C), jnp.float32) * 0.1       # conv_1 HWIO, no bias
    w2 = jax.random.normal(kw2, (3, 3, C, C), jnp.float32) * 0.1       # conv_2 HWIO
    b2 = jax.random.normal(kb2, (C,), jnp.float32) * 0.1               # conv_2 bias
    bn_g = 1.0 + 0.1 * jax.random.normal(kg1, (C,), jnp.float32)       # BatchNorm2d affine
    bn_b = 0.1 * jax.random.normal(kb1, (C,), jnp.float32)
    ln_g = 1.0 + 0.1 * jax.random.normal(kg2, (C, H, W), jnp.float32)  # LayerNorm affine
    ln_b = 0.1 * jax.random.normal(kb2l, (C, H, W), jnp.float32)

    out = resblock_forward(x_nchw, w1, w2, b2, bn_g, bn_b, ln_g, ln_b)
    out = jax.block_until_ready(out)

    ref = resblock_reference(x_nchw, w1, w2, b2, bn_g, bn_b, ln_g, ln_b)
    assert out.shape == ref.shape == (N, C, H, W)
    max_err = float(jnp.max(jnp.abs(out - ref)))
    # bf16 MXU operands (per perf review) give ~1e-3..5e-3 max abs deviation from the
    # f32 reference at these magnitudes; 2e-2 still catches any structural bug.
    assert max_err < 2e-2, f"mismatch vs reference: max abs err = {max_err}"
    print("KERNEL_OK")
</pallas_src>

<mosaic_0001>
module attributes {stable_mosaic.version = 11 : i64} {
  func.func @_resblock_kernel(%arg0: i32, %arg1: memref<2x16x128xf32, #tpu.memory_space<vmem>>, %arg2: memref<384x128xbf16, #tpu.memory_space<vmem>>, %arg3: memref<384x128xbf16, #tpu.memory_space<vmem>>, %arg4: memref<1x1x128xf32, #tpu.memory_space<vmem>>, %arg5: memref<1x1x128xf32, #tpu.memory_space<vmem>>, %arg6: memref<1x16x128xf32, #tpu.memory_space<vmem>>, %arg7: memref<1x16x128xf32, #tpu.memory_space<vmem>>, %arg8: memref<1x1x128xf32, #tpu.memory_space<vmem>>, %arg9: memref<2x16x128xf32, #tpu.memory_space<vmem>>) attributes {dimension_semantics = [#tpu.dimension_semantics<arbitrary>], iteration_bounds = array<i64: 1>, scalar_prefetch = 0 : i64, scratch_operands = 0 : i64, tpu.core_type = #tpu.core_type<tc>, window_params = [{pipeline_mode = #tpu.pipeline_mode<synchronous>, transform_indices = @transform_0, window_bounds = array<i64: 2, 16, 128>}, {pipeline_mode = #tpu.pipeline_mode<synchronous>, transform_indices = @transform_1, window_bounds = array<i64: 384, 128>}, {pipeline_mode = #tpu.pipeline_mode<synchronous>, transform_indices = @transform_2, window_bounds = array<i64: 384, 128>}, {pipeline_mode = #tpu.pipeline_mode<synchronous>, transform_indices = @transform_3, window_bounds = array<i64: 1, 1, 128>}, {pipeline_mode = #tpu.pipeline_mode<synchronous>, transform_indices = @transform_4, window_bounds = array<i64: 1, 1, 128>}, {pipeline_mode = #tpu.pipeline_mode<synchronous>, transform_indices = @transform_5, window_bounds = array<i64: 1, 16, 128>}, {pipeline_mode = #tpu.pipeline_mode<synchronous>, transform_indices = @transform_6, window_bounds = array<i64: 1, 16, 128>}, {pipeline_mode = #tpu.pipeline_mode<synchronous>, transform_indices = @transform_7, window_bounds = array<i64: 1, 1, 128>}, {pipeline_mode = #tpu.pipeline_mode<synchronous>, transform_indices = @transform_8, window_bounds = array<i64: 2, 16, 128>}]} {
    %c0 = arith.constant 0 : index
    %c0_0 = arith.constant 0 : index
    %c0_1 = arith.constant 0 : index
    %0 = vector.load %arg1[%c0, %c0_0, %c0_1] : memref<2x16x128xf32, #tpu.memory_space<vmem>>, vector<2x16x128xf32>
    %cst = arith.constant dense<0.000000e+00> : vector<16x128xf32>
    %1 = vector.multi_reduction <add>, %0, %cst [0] : vector<2x16x128xf32> to vector<16x128xf32>
    %cst_2 = arith.constant dense<0.000000e+00> : vector<128xf32>
    %2 = vector.multi_reduction <add>, %1, %cst_2 [0] : vector<16x128xf32> to vector<128xf32>
    %3 = vector.shape_cast %2 : vector<128xf32> to vector<1x128xf32>
    %c8_i32 = arith.constant 8 : i32
    %4 = tpu.dynamic_rotate %3 by %c8_i32 dim 1 : vector<1x128xf32>, i32 -> vector<1x128xf32>
    %5 = arith.addf %3, %4 : vector<1x128xf32>
    %c16_i32 = arith.constant 16 : i32
    %6 = tpu.dynamic_rotate %5 by %c16_i32 dim 1 : vector<1x128xf32>, i32 -> vector<1x128xf32>
    %7 = arith.addf %5, %6 : vector<1x128xf32>
    %c32_i32 = arith.constant 32 : i32
    %8 = tpu.dynamic_rotate %7 by %c32_i32 dim 1 : vector<1x128xf32>, i32 -> vector<1x128xf32>
    %9 = arith.addf %7, %8 : vector<1x128xf32>
    %c64_i32 = arith.constant 64 : i32
    %10 = tpu.dynamic_rotate %9 by %c64_i32 dim 1 : vector<1x128xf32>, i32 -> vector<1x128xf32>
    %11 = arith.addf %9, %10 : vector<1x128xf32>
    %12 = vector.shape_cast %11 : vector<1x128xf32> to vector<1x1x128xf32>
    %13 = arith.mulf %0, %0 : vector<2x16x128xf32>
    %cst_3 = arith.constant dense<0.000000e+00> : vector<16x128xf32>
    %14 = vector.multi_reduction <add>, %13, %cst_3 [0] : vector<2x16x128xf32> to vector<16x128xf32>
    %cst_4 = arith.constant dense<0.000000e+00> : vector<128xf32>
    %15 = vector.multi_reduction <add>, %14, %cst_4 [0] : vector<16x128xf32> to vector<128xf32>
    %16 = vector.shape_cast %15 : vector<128xf32> to vector<1x128xf32>
    %c8_i32_5 = arith.constant 8 : i32
    %17 = tpu.dynamic_rotate %16 by %c8_i32_5 dim 1 : vector<1x128xf32>, i32 -> vector<1x128xf32>
    %18 = arith.addf %16, %17 : vector<1x128xf32>
    %c16_i32_6 = arith.constant 16 : i32
    %19 = tpu.dynamic_rotate %18 by %c16_i32_6 dim 1 : vector<1x128xf32>, i32 -> vector<1x128xf32>
    %20 = arith.addf %18, %19 : vector<1x128xf32>
    %c32_i32_7 = arith.constant 32 : i32
    %21 = tpu.dynamic_rotate %20 by %c32_i32_7 dim 1 : vector<1x128xf32>, i32 -> vector<1x128xf32>
    %22 = arith.addf %20, %21 : vector<1x128xf32>
    %c64_i32_8 = arith.constant 64 : i32
    %23 = tpu.dynamic_rotate %22 by %c64_i32_8 dim 1 : vector<1x128xf32>, i32 -> vector<1x128xf32>
    %24 = arith.addf %22, %23 : vector<1x128xf32>
    %25 = vector.shape_cast %24 : vector<1x128xf32> to vector<1x1x128xf32>
    %cst_9 = arith.constant 0.001953125 : f32
    %26 = vector.broadcast %cst_9 : f32 to vector<1x1x128xf32>
    %27 = arith.mulf %12, %26 : vector<1x1x128xf32>
    %cst_10 = arith.constant 0.001953125 : f32
    %28 = vector.broadcast %cst_10 : f32 to vector<1x1x128xf32>
    %29 = arith.mulf %25, %28 : vector<1x1x128xf32>
    %30 = arith.mulf %27, %27 : vector<1x1x128xf32>
    %31 = arith.subf %29, %30 : vector<1x1x128xf32>
    %32 = vector.broadcast %27 : vector<1x1x128xf32> to vector<2x16x128xf32>
    %33 = arith.subf %0, %32 : vector<2x16x128xf32>
    %cst_11 = arith.constant 9.99999974E-6 : f32
    %34 = vector.broadcast %cst_11 : f32 to vector<1x1x128xf32>
    %35 = arith.addf %31, %34 : vector<1x1x128xf32>
    %36 = math.rsqrt %35 : vector<1x1x128xf32>
    %37 = vector.broadcast %36 : vector<1x1x128xf32> to vector<2x16x128xf32>
    %38 = arith.mulf %33, %37 : vector<2x16x128xf32>
    %c0_12 = arith.constant 0 : index
    %c0_13 = arith.constant 0 : index
    %c0_14 = arith.constant 0 : index
    %39 = vector.load %arg4[%c0_12, %c0_13, %c0_14] : memref<1x1x128xf32, #tpu.memory_space<vmem>>, vector<1x1x128xf32>
    %40 = vector.broadcast %39 : vector<1x1x128xf32> to vector<2x16x128xf32>
    %41 = arith.mulf %38, %40 : vector<2x16x128xf32>
    %c0_15 = arith.constant 0 : index
    %c0_16 = arith.constant 0 : index
    %c0_17 = arith.constant 0 : index
    %42 = vector.load %arg5[%c0_15, %c0_16, %c0_17] : memref<1x1x128xf32, #tpu.memory_space<vmem>>, vector<1x1x128xf32>
    %43 = vector.broadcast %42 : vector<1x1x128xf32> to vector<2x16x128xf32>
    %44 = arith.addf %41, %43 : vector<2x16x128xf32>
    %cst_18 = arith.constant 0.000000e+00 : f32
    %45 = vector.broadcast %cst_18 : f32 to vector<2x16x128xf32>
    %46 = arith.maximumf %44, %45 : vector<2x16x128xf32>
    %cst_19 = arith.constant 0.000000e+00 : f32
    %47 = vector.broadcast %cst_19 : f32 to vector<2x1x128xf32>
    %48 = vector.extract_strided_slice %46 {offsets = [0, 0, 0], sizes = [2, 15, 128], strides = [1, 1, 1]} : vector<2x16x128xf32> to vector<2x15x128xf32>
    %49 = tpu.concatenate %47, %48 in 1 : vector<2x1x128xf32>, vector<2x15x128xf32> -> vector<2x16x128xf32>
    %50 = vector.extract_strided_slice %46 {offsets = [0, 1, 0], sizes = [2, 15, 128], strides = [1, 1, 1]} : vector<2x16x128xf32> to vector<2x15x128xf32>
    %51 = tpu.concatenate %50, %47 in 1 : vector<2x15x128xf32>, vector<2x1x128xf32> -> vector<2x16x128xf32>
    %52 = tpu.concatenate %49, %46, %51 in 2 : vector<2x16x128xf32>, vector<2x16x128xf32>, vector<2x16x128xf32> -> vector<2x16x384xf32>
    %53 = vector.shape_cast %52 : vector<2x16x384xf32> to vector<32x384xf32>
    %54 = arith.truncf %53 : vector<32x384xf32> to vector<32x384xbf16>
    %c0_20 = arith.constant 0 : index
    %c0_21 = arith.constant 0 : index
    %55 = vector.load %arg2[%c0_20, %c0_21] : memref<384x128xbf16, #tpu.memory_space<vmem>>, vector<384x128xbf16>
    %cst_22 = arith.constant dense<0.000000e+00> : vector<32x128xf32>
    %56 = tpu.matmul %54, %55, %cst_22 {dimension_numbers = #tpu.dot_dimension_numbers<[1], [0], [0], [1], [0, 0, 1, 1], [], []>} : vector<32x384xbf16>, vector<384x128xbf16>, vector<32x128xf32> -> vector<32x128xf32>
    %57 = vector.shape_cast %56 : vector<32x128xf32> to vector<2x16x128xf32>
    %cst_23 = arith.constant dense<0.000000e+00> : vector<2x16xf32>
    %58 = vector.multi_reduction <add>, %57, %cst_23 [2] : vector<2x16x128xf32> to vector<2x16xf32>
    %59 = vector.shape_cast %58 : vector<2x16xf32> to vector<2x16x1xf32>
    %cst_24 = arith.constant dense<0.000000e+00> : vector<2x1xf32>
    %60 = vector.multi_reduction <add>, %59, %cst_24 [1] : vector<2x16x1xf32> to vector<2x1xf32>
    %61 = vector.shape_cast %60 : vector<2x1xf32> to vector<2x1x1xf32>
    %62 = arith.mulf %57, %57 : vector<2x16x128xf32>
    %cst_25 = arith.constant dense<0.000000e+00> : vector<2x16xf32>
    %63 = vector.multi_reduction <add>, %62, %cst_25 [2] : vector<2x16x128xf32> to vector<2x16xf32>
    %64 = vector.shape_cast %63 : vector<2x16xf32> to vector<2x16x1xf32>
    %cst_26 = arith.constant dense<0.000000e+00> : vector<2x1xf32>
    %65 = vector.multi_reduction <add>, %64, %cst_26 [1] : vector<2x16x1xf32> to vector<2x1xf32>
    %66 = vector.shape_cast %65 : vector<2x1xf32> to vector<2x1x1xf32>
    %cst_27 = arith.constant 4.8828125E-4 : f32
    %67 = vector.broadcast %cst_27 : f32 to vector<2x1x1xf32>
    %68 = arith.mulf %61, %67 : vector<2x1x1xf32>
    %cst_28 = arith.constant 4.8828125E-4 : f32
    %69 = vector.broadcast %cst_28 : f32 to vector<2x1x1xf32>
    %70 = arith.mulf %66, %69 : vector<2x1x1xf32>
    %71 = arith.mulf %68, %68 : vector<2x1x1xf32>
    %72 = arith.subf %70, %71 : vector<2x1x1xf32>
    %73 = vector.broadcast %68 : vector<2x1x1xf32> to vector<2x16x128xf32>
    %74 = arith.subf %57, %73 : vector<2x16x128xf32>
    %cst_29 = arith.constant 9.99999974E-6 : f32
    %75 = vector.broadcast %cst_29 : f32 to vector<2x1x1xf32>
    %76 = arith.addf %72, %75 : vector<2x1x1xf32>
    %77 = math.rsqrt %76 : vector<2x1x1xf32>
    %78 = vector.broadcast %77 : vector<2x1x1xf32> to vector<2x16x128xf32>
    %79 = arith.mulf %74, %78 : vector<2x16x128xf32>
    %c0_30 = arith.constant 0 : index
    %c0_31 = arith.constant 0 : index
    %c0_32 = arith.constant 0 : index
    %80 = vector.load %arg6[%c0_30, %c0_31, %c0_32] : memref<1x16x128xf32, #tpu.memory_space<vmem>>, vector<1x16x128xf32>
    %81 = vector.broadcast %80 : vector<1x16x128xf32> to vector<2x16x128xf32>
    %82 = arith.mulf %79, %81 : vector<2x16x128xf32>
    %c0_33 = arith.constant 0 : index
    %c0_34 = arith.constant 0 : index
    %c0_35 = arith.constant 0 : index
    %83 = vector.load %arg7[%c0_33, %c0_34, %c0_35] : memref<1x16x128xf32, #tpu.memory_space<vmem>>, vector<1x16x128xf32>
    %84 = vector.broadcast %83 : vector<1x16x128xf32> to vector<2x16x128xf32>
    %85 = arith.addf %82, %84 : vector<2x16x128xf32>
    %cst_36 = arith.constant 0.000000e+00 : f32
    %86 = vector.broadcast %cst_36 : f32 to vector<2x16x128xf32>
    %87 = arith.maximumf %85, %86 : vector<2x16x128xf32>
    %cst_37 = arith.constant 0.000000e+00 : f32
    %88 = vector.broadcast %cst_37 : f32 to vector<2x1x128xf32>
    %89 = vector.extract_strided_slice %87 {offsets = [0, 0, 0], sizes = [2, 15, 128], strides = [1, 1, 1]} : vector<2x16x128xf32> to vector<2x15x128xf32>
    %90 = tpu.concatenate %88, %89 in 1 : vector<2x1x128xf32>, vector<2x15x128xf32> -> vector<2x16x128xf32>
    %91 = vector.extract_strided_slice %87 {offsets = [0, 1, 0], sizes = [2, 15, 128], strides = [1, 1, 1]} : vector<2x16x128xf32> to vector<2x15x128xf32>
    %92 = tpu.concatenate %91, %88 in 1 : vector<2x15x128xf32>, vector<2x1x128xf32> -> vector<2x16x128xf32>
    %93 = tpu.concatenate %90, %87, %92 in 2 : vector<2x16x128xf32>, vector<2x16x128xf32>, vector<2x16x128xf32> -> vector<2x16x384xf32>
    %94 = vector.shape_cast %93 : vector<2x16x384xf32> to vector<32x384xf32>
    %95 = arith.truncf %94 : vector<32x384xf32> to vector<32x384xbf16>
    %c0_38 = arith.constant 0 : index
    %c0_39 = arith.constant 0 : index
    %96 = vector.load %arg3[%c0_38, %c0_39] : memref<384x128xbf16, #tpu.memory_space<vmem>>, vector<384x128xbf16>
    %cst_40 = arith.constant dense<0.000000e+00> : vector<32x128xf32>
    %97 = tpu.matmul %95, %96, %cst_40 {dimension_numbers = #tpu.dot_dimension_numbers<[1], [0], [0], [1], [0, 0, 1, 1], [], []>} : vector<32x384xbf16>, vector<384x128xbf16>, vector<32x128xf32> -> vector<32x128xf32>
    %98 = vector.shape_cast %97 : vector<32x128xf32> to vector<2x16x128xf32>
    %c0_41 = arith.constant 0 : index
    %c0_42 = arith.constant 0 : index
    %c0_43 = arith.constant 0 : index
    %99 = vector.load %arg8[%c0_41, %c0_42, %c0_43] : memref<1x1x128xf32, #tpu.memory_space<vmem>>, vector<1x1x128xf32>
    %100 = vector.broadcast %99 : vector<1x1x128xf32> to vector<2x16x128xf32>
    %101 = arith.addf %98, %100 : vector<2x16x128xf32>
    %102 = arith.addf %0, %101 : vector<2x16x128xf32>
    %c0_44 = arith.constant 0 : index
    %c0_45 = arith.constant 0 : index
    %c0_46 = arith.constant 0 : index
    %103 = vector.load %arg9[%c0_44, %c0_45, %c0_46] : memref<2x16x128xf32, #tpu.memory_space<vmem>>, vector<2x16x128xf32>
    tpu.vector_store %arg9[%c0_44, %c0_45, %c0_46], %102 {strides = array<i32>} : memref<2x16x128xf32, #tpu.memory_space<vmem>>, vector<2x16x128xf32>,
    return
  }
  func.func @transform_0(%arg0: i32) -> (i32, i32, i32) {
    %c0_i32 = arith.constant 0 : i32
    %c0_i32_0 = arith.constant 0 : i32
    %c0_i32_1 = arith.constant 0 : i32
    %c0_i32_2 = arith.constant 0 : i32
    return %c0_i32, %c0_i32_0, %c0_i32_1 : i32, i32, i32
  }
  func.func @transform_1(%arg0: i32) -> (i32, i32) {
    %c0_i32 = arith.constant 0 : i32
    %c0_i32_0 = arith.constant 0 : i32
    %c0_i32_1 = arith.constant 0 : i32
    return %c0_i32, %c0_i32_0 : i32, i32
  }
  func.func @transform_2(%arg0: i32) -> (i32, i32) {
    %c0_i32 = arith.constant 0 : i32
    %c0_i32_0 = arith.constant 0 : i32
    %c0_i32_1 = arith.constant 0 : i32
    return %c0_i32, %c0_i32_0 : i32, i32
  }
  func.func @transform_3(%arg0: i32) -> (i32, i32, i32) {
    %c0_i32 = arith.constant 0 : i32
    %c0_i32_0 = arith.constant 0 : i32
    %c0_i32_1 = arith.constant 0 : i32
    %c0_i32_2 = arith.constant 0 : i32
    return %c0_i32, %c0_i32_0, %c0_i32_1 : i32, i32, i32
  }
  func.func @transform_4(%arg0: i32) -> (i32, i32, i32) {
    %c0_i32 = arith.constant 0 : i32
    %c0_i32_0 = arith.constant 0 : i32
    %c0_i32_1 = arith.constant 0 : i32
    %c0_i32_2 = arith.constant 0 : i32
    return %c0_i32, %c0_i32_0, %c0_i32_1 : i32, i32, i32
  }
  func.func @transform_5(%arg0: i32) -> (i32, i32, i32) {
    %c0_i32 = arith.constant 0 : i32
    %c0_i32_0 = arith.constant 0 : i32
    %c0_i32_1 = arith.constant 0 : i32
    %c0_i32_2 = arith.constant 0 : i32
    return %c0_i32, %c0_i32_0, %c0_i32_1 : i32, i32, i32
  }
  func.func @transform_6(%arg0: i32) -> (i32, i32, i32) {
    %c0_i32 = arith.constant 0 : i32
    %c0_i32_0 = arith.constant 0 : i32
    %c0_i32_1 = arith.constant 0 : i32
    %c0_i32_2 = arith.constant 0 : i32
    return %c0_i32, %c0_i32_0, %c0_i32_1 : i32, i32, i32
  }
  func.func @transform_7(%arg0: i32) -> (i32, i32, i32) {
    %c0_i32 = arith.constant 0 : i32
    %c0_i32_0 = arith.constant 0 : i32
    %c0_i32_1 = arith.constant 0 : i32
    %c0_i32_2 = arith.constant 0 : i32
    return %c0_i32, %c0_i32_0, %c0_i32_1 : i32, i32, i32
  }
  func.func @transform_8(%arg0: i32) -> (i32, i32, i32) {
    %c0_i32 = arith.constant 0 : i32
    %c0_i32_0 = arith.constant 0 : i32
    %c0_i32_1 = arith.constant 0 : i32
    %c0_i32_2 = arith.constant 0 : i32
    return %c0_i32, %c0_i32_0, %c0_i32_1 : i32, i32, i32
  }
}

</mosaic_0001>

<bundles_post_ra>
// kernel: tile.18
= control target key start
LH: loop header
LB: loop body
LE: loop exit
PB: predicated region body
PF: predicated region fallthrough
CT: control target
= control target key end

     0   :  { %s28_s0 = inlined_call_operand.vmem [shape: f32[8], index: 0, kind: input, shape index: {}]   ;;  %s29_s1 = inlined_call_operand.vmem [shape: f32[16,8], index: 1, kind: output, shape index: {}]  }
   0x1   :  { %v4_v0 = vld [vmem:[%s28_s0] ss:$0 sm:$0xff] }
   0x2   :  { %5 = vst [vmem:[%s29_s1] sm:$0xff] %v4_v0  ;;  %8 = vst [vmem:[%s29_s1 + $0x8] sm:$0xff] %v4_v0 }

// kernel: tile.19
= control target key start
LH: loop header
LB: loop body
LE: loop exit
PB: predicated region body
PF: predicated region fallthrough
CT: control target
= control target key end

     0   :  { %s131_s10 = smov 120   ;;  %s132_s11 = smov 104   ;;  %vm3_vm0 = vcmask 64512   ;;  %vm9_vm1 = vcmask 1048512   ;;  %vm15_vm2 = vcmask 982912   ;;  %vm21_vm3 = vcmask 917312   ;;  %s207_s0 = inlined_call_operand.vmem [shape: f32[16,8], index: 0, kind: input, shape index: {}]   ;;  %s208_s1 = inlined_call_operand.vmem [shape: f32[1,1,128], index: 1, kind: output, shape index: {}]  }
   0x1   :  { %v101_v0 = vld [vmem:[%s207_s0 + $0xf] sm:$0x1]   ;;  %v103_v1 = vld [vmem:[%s207_s0 + $0xd] sm:$0x1]   ;;  %v102_v2 = vld [vmem:[%s207_s0 + $0xe] sm:$0x1]  }
   0x2   :  { %7 = vrot.lane.b32.xlu0 %v101_v0, %s131_s10  ;;  %19 = vrot.lane.b32.xlu1 %v103_v1, %s132_s11  ;;  %v104_v3 = vld [vmem:[%s207_s0 + $0xc] sm:$0x1]   ;;  %s133_s16 = smov 112   ;;  %s134_s17 = smov 96   ;;  %v105_v4 = vld [vmem:[%s207_s0 + $0xb] sm:$0x1]  }
   0x3   :  { %v106_v5 = vld [vmem:[%s207_s0 + $0xa] sm:$0x1]   ;;  %v2_v6 = vld [vmem:[%s207_s0] sm:$0x1]   ;;  %s135_s24 = smov 88   ;;  %s136_s25 = smov 80  }
   0x4   :  { %4 = vst.msk [vmem:[#allocation0] sm:$0x1] %vm3_vm0, %v2_v6   ;;  %v107_v7 = vld [vmem:[%s207_s0 + $0x9] sm:$0x1]   ;;  %v108_v8 = vld [vmem:[%s207_s0 + $0x8] sm:$0x1]  }
   0x5   :  { %s137_s30 = smov 72   ;;  %s138_s2 = smov 64   ;;  %v109_v9 = vld [vmem:[%s207_s0 + $0x7] sm:$0x1]   ;;  %v110_v10 = vld [vmem:[%s207_s0 + $0x6] sm:$0x1]  }
   0x6   :  { %13 = vrot.lane.b32.xlu0 %v102_v2, %s133_s16  ;;  %25 = vrot.lane.b32.xlu1 %v104_v3, %s134_s17  ;;  %s139_s7 = smov 56   ;;  %s140_s8 = smov 48   ;;  %v111_v11 = vld [vmem:[%s207_s0 + $0x5] sm:$0x1]   ;;  %v112_v12 = vld [vmem:[%s207_s0 + $0x4] sm:$0x1]  }
   0x7   :  { %s141_s13 = smov 40   ;;  %s142_s14 = smov 32   ;;  %v113_v13 = vld [vmem:[%s207_s0 + $0x3] sm:$0x1]   ;;  %v114_v14 = vld [vmem:[%s207_s0 + $0x2] sm:$0x1]  }
   0x8   :  { %s143_s19 = smov 24   ;;  %s144_s20 = smov 16   ;;  %v115_v15 = vld [vmem:[%s207_s0 + $0x1] sm:$0x1]   ;;  %vm27_vm4 = vcmask 851712   ;;  %vm33_vm5 = vcmask 786112  }
   0x9   :  { %s145_s0 = smov 8   ;;  %vm39_vm6 = vcmask 720512   ;;  %vm45_vm7 = vcmask 654912   ;;  %vm51_vm8 = vcmask 589312   ;;  %vm57_vm9 = vcmask 523712  }
   0xa   :  { %31 = vrot.lane.b32.xlu0 %v105_v4, %s135_s24  ;;  %37 = vrot.lane.b32.xlu1 %v106_v5, %s136_s25  ;;  %vm63_vm10 = vcmask 458112   ;;  %vm69_vm11 = vcmask 392512   ;;  %vm75_vm12 = vcmask 326912   ;;  %vm81_vm13 = vcmask 261312  }
   0xb   :  { %vm87_vm14 = vcmask 195712   ;;  %vm93_vm15 = vcmask 130112  }
   0xe   :  { %43 = vrot.lane.b32.xlu0 %v107_v7, %s137_s30  ;;  %49 = vrot.lane.b32.xlu1 %v108_v8, %s138_s2 }
  0x12   :  { %55 = vrot.lane.b32.xlu0 %v109_v9, %s139_s7  ;;  %61 = vrot.lane.b32.xlu1 %v110_v10, %s140_s8 }
  0x16   :  { %67 = vrot.lane.b32.xlu0 %v111_v11, %s141_s13  ;;  %73 = vrot.lane.b32.xlu1 %v112_v12, %s142_s14 }
  0x1a   :  { %79 = vrot.lane.b32.xlu0 %v113_v13, %s143_s19  ;;  %85 = vrot.lane.b32.xlu1 %v114_v14, %s144_s20 }
  0x1e   :  { %91 = vrot.lane.b32.xlu0 %v115_v15, %s145_s0 }
  0x74   :  { %v8_v16 = vpop.permute.xlu0 %7   ;;  %v20_v17 = vpop.permute.xlu1 %19  }
  0x75   :  { %10 = vst.msk [vmem:[#allocation0] sm:$0x1] %vm9_vm1, %v8_v16  }
  0x78   :  { %v14_v18 = vpop.permute.xlu0 %13   ;;  %v26_v19 = vpop.permute.xlu1 %25  }
  0x79   :  { %16 = vst.msk [vmem:[#allocation0] sm:$0x1] %vm15_vm2, %v14_v18  }
  0x7a   :  { %22 = vst.msk [vmem:[#allocation0] sm:$0x1] %vm21_vm3, %v20_v17  }
  0x7b   :  { %28 = vst.msk [vmem:[#allocation0] sm:$0x1] %vm27_vm4, %v26_v19  }
  0x7c   :  { %v32_v20 = vpop.permute.xlu0 %31   ;;  %v38_v21 = vpop.permute.xlu1 %37  }
  0x7d   :  { %34 = vst.msk [vmem:[#allocation0] sm:$0x1] %vm33_vm5, %v32_v20  }
  0x7e   :  { %40 = vst.msk [vmem:[#allocation0] sm:$0x1] %vm39_vm6, %v38_v21  }
  0x80   :  { %v44_v22 = vpop.permute.xlu0 %43   ;;  %v50_v23 = vpop.permute.xlu1 %49  }
  0x81   :  { %46 = vst.msk [vmem:[#allocation0] sm:$0x1] %vm45_vm7, %v44_v22  }
  0x82   :  { %52 = vst.msk [vmem:[#allocation0] sm:$0x1] %vm51_vm8, %v50_v23  }
  0x84   :  { %v56_v24 = vpop.permute.xlu0 %55   ;;  %v62_v25 = vpop.permute.xlu1 %61  }
  0x85   :  { %58 = vst.msk [vmem:[#allocation0] sm:$0x1] %vm57_vm9, %v56_v24  }
  0x86   :  { %64 = vst.msk [vmem:[#allocation0] sm:$0x1] %vm63_vm10, %v62_v25  }
  0x88   :  { %v68_v26 = vpop.permute.xlu0 %67   ;;  %v74_v27 = vpop.permute.xlu1 %73  }
  0x89   :  { %70 = vst.msk [vmem:[#allocation0] sm:$0x1] %vm69_vm11, %v68_v26  }
  0x8a   :  { %76 = vst.msk [vmem:[#allocation0] sm:$0x1] %vm75_vm12, %v74_v27  }
  0x8c   :  { %v80_v28 = vpop.permute.xlu0 %79   ;;  %v86_v29 = vpop.permute.xlu1 %85  }
  0x8d   :  { %82 = vst.msk [vmem:[#allocation0] sm:$0x1] %vm81_vm13, %v80_v28  }
  0x8e   :  { %88 = vst.msk [vmem:[#allocation0] sm:$0x1] %vm87_vm14, %v86_v29  }
  0x90   :  { %v92_v30 = vpop.permute.xlu0 %91  }
  0x91   :  { %94 = vst.msk [vmem:[#allocation0] sm:$0x1] %vm93_vm15, %v92_v30  }
  0x98   :  { %v98_v31 = vld [vmem:[#allocation0] sm:$0x1] }
  0x99   :  { %100 = vst [vmem:[%s208_s1] sm:$0x1] %v98_v31 }

// kernel: resblock_forward.1
= control target key start
LH: loop header
LB: loop body
LE: loop exit
PB: predicated region body
PF: predicated region fallthrough
CT: control target
= control target key end

     0   :  { %s1140_s13 = smov 16   ;;  %s1141_s14 = smov 32   ;;  %vm132_vm0 = vcmask 1040384   ;;  %vm145_vm2 = vcmask 1046528   ;;  %vm1143_vm3 = vmmov 1   ;;  %s1464_s0 = inlined_call_operand.vmem [shape: f32[2,16,128], index: 0, kind: input, shape index: {}]   ;;  %s1465_s1 = inlined_call_operand.vmem [shape: bf16[384,128], index: 1, kind: input, shape index: {}]   ;;  %s1466_s3 = inlined_call_operand.vmem [shape: f32[1,1,128], index: 3, kind: input, shape index: {}]   ;;  %s1467_s4 = inlined_call_operand.vmem [shape: f32[1,1,128], index: 4, kind: input, shape index: {}]   ;;  %s1468_s2 = inlined_call_operand.vmem [shape: bf16[384,128], index: 2, kind: input, shape index: {}]   ;;  %s1469_s5 = inlined_call_operand.vmem [shape: f32[1,16,128], index: 5, kind: input, shape index: {}]   ;;  %s1470_s6 = inlined_call_operand.vmem [shape: f32[1,16,128], index: 6, kind: input, shape index: {}]   ;;  %s1471_s7 = inlined_call_operand.vmem [shape: f32[1,1,128], index: 7, kind: input, shape index: {}]   ;;  %s1472_s8 = inlined_call_operand.vmem [shape: f32[2,16,128], index: 8, kind: output, shape index: {}]  }
   0x1   :  { %v1192_v0 = vld [vmem:[%s1464_s0] sm:$0xff]  ;;  %v1197_v1 = vld [vmem:[%s1464_s0 + $0x8] sm:$0xff]  ;;  %v1202_v2 = vld [vmem:[%s1464_s0 + $0x10] sm:$0xff]  ;;  %s1142_s29 = smov 64  }
   0x2   :  { %v1207_v3 = vld [vmem:[%s1464_s0 + $0x18] sm:$0xff]  ;;  %v34_v4 = vadd.f32 %v1202_v2, %v1192_v0  ;;  %v55_v5 = vmul.f32 %v1192_v0, %v1192_v0  ;;  %v56_v6 = vmul.f32 %v1197_v1, %v1197_v1  ;;  %v57_v7 = vmul.f32 %v1202_v2, %v1202_v2  ;;  %s1139_s0 = smov 8   ;;  %v1085_v34 = vld [vmem:[%s1465_s1 + $0x40] sm:$0xff]   ;;  %v1088_v37 = vld [vmem:[%s1465_s1 + $0x48] sm:$0xff]  }
   0x3   :  { %v35_v8 = vadd.f32 %v1207_v3, %v1197_v1  ;;  %v58_v9 = vmul.f32 %v1207_v3, %v1207_v3  ;;  %v1086_v35 = vld [vmem:[%s1465_s1] sm:$0xff]   ;;  %964 = vmatprep.subr.bf16.mxu0 %v1085_v34  ;;  %v1089_v38 = vld [vmem:[%s1465_s1 + $0x8] sm:$0xff]   ;;  %v1091_v42 = vld [vmem:[%s1465_s1 + $0x50] sm:$0xff]  }
   0x4   :  { %v59_v10 = vadd.f32 %v57_v7, %v55_v5  ;;  %v1087_v36 = vld [vmem:[%s1465_s1 + $0x80] sm:$0xff]   ;;  %965 = vmatpush3.bf16.msra.mxu0 %v1086_v35  ;;  %v1090_v39 = vld [vmem:[%s1465_s1 + $0x88] sm:$0xff]   ;;  %v1092_v43 = vld [vmem:[%s1465_s1 + $0x10] sm:$0xff]   ;;  %v84_v7 = vlaneseq }
   0x5   :  { %v36_v11 = vadd.f32 %v35_v8, %v34_v4  ;;  %v60_v12 = vadd.f32 %v58_v9, %v56_v6  ;;  %1040 = vmatprep.subr.bf16.mxu1 %v1087_v36  ;;  %966 = vmatprep.subr.bf16.mxu0 %v1088_v37  ;;  %v1093_v44 = vld [vmem:[%s1465_s1 + $0x90] sm:$0xff]   ;;  %v1094_v47 = vld [vmem:[%s1465_s1 + $0x58] sm:$0xff]   ;;  %v1097_v50 = vld [vmem:[%s1465_s1 + $0x60] sm:$0xff]  }
   0x6   :  { %1041 = vmatpush3.bf16.msra.mxu1 %v1087_v36  ;;  %v1095_v48 = vld [vmem:[%s1465_s1 + $0x18] sm:$0xff]   ;;  %v1098_v51 = vld [vmem:[%s1465_s1 + $0x20] sm:$0xff]   ;;  %v1100_v53 = vld [vmem:[%s1465_s1 + $0x68] sm:$0xff]  }
   0x7   :  { %v37_v13 = vrot.slane %v36_v11, 4  ;;  %v61_v14 = vadd.f32 %v60_v12, %v59_v10  ;;  %1042 = vmatprep.subr.bf16.mxu1 %v1090_v39  ;;  %v1096_v49 = vld [vmem:[%s1465_s1 + $0x98] sm:$0xff]   ;;  %v1099_v52 = vld [vmem:[%s1465_s1 + $0xa0] sm:$0xff]   ;;  %v1101_v54 = vld [vmem:[%s1465_s1 + $0x28] sm:$0xff]  }
   0x8   :  { %967 = vmatpush3.bf16.msra.mxu0 %v1089_v38  ;;  %v1102_v55 = vld [vmem:[%s1465_s1 + $0xa8] sm:$0xff]   ;;  %v1103_v56 = vld [vmem:[%s1465_s1 + $0x70] sm:$0xff]   ;;  %v1106_v59 = vld [vmem:[%s1465_s1 + $0x78] sm:$0xff]  }
   0x9   :  { %v38_v15 = vadd.f32 %v37_v13, %v36_v11  ;;  %v62_v16 = vrot.slane %v61_v14, 4  ;;  %968 = vmatprep.subr.bf16.mxu0 %v1091_v42  ;;  %v1105_v57 = vld [vmem:[%s1465_s1 + $0xb0] sm:$0xff]   ;;  %v1107_v60 = vld [vmem:[%s1465_s1 + $0x38] sm:$0xff]   ;;  %v85_v11 = vshrl.u32 %v84_v7, 7  ;;  %vm911_vm1 = vmneg %vm132_vm0 }
   0xa   :  { %1043 = vmatpush3.bf16.msra.mxu1 %v1090_v39  ;;  %v1104_v58 = vld [vmem:[%s1465_s1 + $0x30] sm:$0xff]   ;;  %v1108_v61 = vld [vmem:[%s1465_s1 + $0xb8] sm:$0xff]   ;;  %vm1305_vm4 = vmpackc.low %vm1143_vm3, %vm911_vm1 }
   0xb   :  { %v39_v17 = vrot.slane %v38_v15, 2  ;;  %v63_v18 = vadd.f32 %v62_v16, %v61_v14  ;;  %1044 = vmatprep.subr.bf16.mxu1 %v1093_v44  ;;  %v86_v13 = vsub.s32 0, %v85_v11  ;;  %vm1311_vm5 = vmpackc.low %vm145_vm2, %vm1143_vm3 }
   0xc   :  { %969 = vmatpush3.bf16.msra.mxu0 %v1092_v43 }
   0xd   :  { %v40_v19 = vadd.f32 %v39_v17, %v38_v15  ;;  %v64_v20 = vrot.slane %v63_v18, 2  ;;  %970 = vmatprep.subr.bf16.mxu0 %v1094_v47 }
   0xe   :  { %1045 = vmatpush3.bf16.msra.mxu1 %v1093_v44 }
   0xf   :  { %v41_v21 = vrot.slane %v40_v19, 1  ;;  %v65_v22 = vadd.f32 %v64_v20, %v63_v18  ;;  %1046 = vmatprep.subr.bf16.mxu1 %v1096_v49 }
  0x10   :  { %971 = vmatpush3.bf16.msra.mxu0 %v1095_v48 }
  0x11   :  { %v42_v23 = vadd.f32 %v41_v21, %v40_v19  ;;  %v66_v24 = vrot.slane %v65_v22, 1  ;;  %972 = vmatprep.subr.bf16.mxu0 %v1097_v50  ;;  %v885_v21 = vld [vmem:[%s1466_s3] ss:$0 sm:$0xff] }
  0x12   :  { %1047 = vmatpush3.bf16.msra.mxu1 %v1096_v49 }
  0x13   :  { %43 = vrot.lane.b32.xlu0 %v42_v23, %s1139_s0  ;;  %v67_v25 = vadd.f32 %v66_v24, %v65_v22  ;;  %1048 = vmatprep.subr.bf16.mxu1 %v1099_v52 }
  0x14   :  { %973 = vmatpush3.bf16.msra.mxu0 %v1098_v51 }
  0x15   :  { %974 = vmatprep.subr.bf16.mxu0 %v1100_v53 }
  0x16   :  { %1049 = vmatpush3.bf16.msra.mxu1 %v1099_v52 }
  0x17   :  { %68 = vrot.lane.b32.xlu0 %v67_v25, %s1139_s0  ;;  %1050 = vmatprep.subr.bf16.mxu1 %v1102_v55 }
  0x18   :  { %975 = vmatpush3.bf16.msra.mxu0 %v1101_v54 }
  0x19   :  { %976 = vmatprep.subr.bf16.mxu0 %v1103_v56 }
  0x1a   :  { %1051 = vmatpush3.bf16.msra.mxu1 %v1102_v55 }
  0x1b   :  { %1052 = vmatprep.subr.bf16.mxu1 %v1105_v57 }
  0x1c   :  { %977 = vmatpush3.bf16.msra.mxu0 %v1104_v58 }
  0x1d   :  { %978 = vmatprep.subr.bf16.mxu0 %v1106_v59 }
  0x1e   :  { %1053 = vmatpush3.bf16.msra.mxu1 %v1105_v57 }
  0x1f   :  { %1054 = vmatprep.subr.bf16.mxu1 %v1108_v61 }
  0x20   :  { %979 = vmatpush3.bf16.msra.mxu0 %v1107_v60 }
  0x22   :  { %1055 = vmatpush3.bf16.msra.mxu1 %v1108_v61 }
  0x85   :  { %v44_v26 = vpop.permute.xlu0 %43 }
  0x86   :  { %v45_v27 = vadd.f32 %v44_v26, %v42_v23  ;;  %v886_v26 = vld [vmem:[%s1467_s4] ss:$0 sm:$0xff] }
  0x88   :  { %46 = vrot.lane.b32.xlu1 %v45_v27, %s1140_s13 }
  0x89   :  { %v69_v28 = vpop.permute.xlu0 %68 }
  0x8a   :  { %v70_v29 = vadd.f32 %v69_v28, %v67_v25 }
  0x8c   :  { %71 = vrot.lane.b32.xlu1 %v70_v29, %s1140_s13 }
  0xfa   :  { %v47_v30 = vpop.permute.xlu1 %46 }
  0xfb   :  { %v48_v31 = vadd.f32 %v47_v30, %v45_v27 }
  0xfd   :  { %49 = vrot.lane.b32.xlu0 %v48_v31, %s1141_s14 }
  0xfe   :  { %v72_v32 = vpop.permute.xlu1 %71 }
  0xff   :  { %v73_v33 = vadd.f32 %v72_v32, %v70_v29 }
 0x101   :  { %74 = vrot.lane.b32.xlu1 %v73_v33, %s1141_s14 }
 0x16f   :  { %v50_v40 = vpop.permute.xlu0 %49 }
 0x170   :  { %v51_v41 = vadd.f32 %v50_v40, %v48_v31 }
 0x172   :  { %52 = vrot.lane.b32.xlu0 %v51_v41, %s1142_s29 }
 0x173   :  { %v75_v45 = vpop.permute.xlu1 %74 }
 0x174   :  { %v76_v46 = vadd.f32 %v75_v45, %v73_v33 }
 0x176   :  { %77 = vrot.lane.b32.xlu1 %v76_v46, %s1142_s29 }
 0x1e4   :  { %v53_v62 = vpop.permute.xlu0 %52 }
 0x1e5   :  { %v54_v63 = vadd.f32 %v53_v62, %v51_v41 }
 0x1e7   :  { %v80_v4 = vmul.f32 0.001953125, %v54_v63 }
 0x1e8   :  { %v78_v5 = vpop.permute.xlu1 %77 }
 0x1e9   :  { %v79_v6 = vadd.f32 %v78_v5, %v76_v46  ;;  %v82_v8 = vmul.f32 %v80_v4, %v80_v4  ;;  %v87_v14 = vrot.slane %v80_v4, %v86_v13 }
 0x1eb   :  { %v81_v9 = vmul.f32 0.001953125, %v79_v6  ;;  %v90_v16 = vsub.f32 %v1202_v2, %v87_v14  ;;  %v91_v17 = vsub.f32 %v1207_v3, %v87_v14  ;;  %v88_v19 = vsub.f32 %v1192_v0, %v87_v14 }
 0x1ec   :  { %v89_v20 = vsub.f32 %v1197_v1, %v87_v14 }
 0x1ed   :  { %v83_v10 = vsub.f32 %v81_v9, %v82_v8 }
 0x1ef   :  { %v92_v12 = vadd.f32 1e-05, %v83_v10 }
 0x1f1   :  { %1133 = vrsqrt.f32 %v92_v12 }
 0x1fb   :  { %v1134_v15 = vpop.eup %1133 }
 0x1fc   :  { %v97_v18 = vrot.slane %v1134_v15, %v86_v13 }
 0x1fe   :  { %v98_v22 = vmul.f32 %v97_v18, %v88_v19  ;;  %v99_v23 = vmul.f32 %v97_v18, %v89_v20  ;;  %v100_v24 = vmul.f32 %v97_v18, %v90_v16  ;;  %v101_v25 = vmul.f32 %v97_v18, %v91_v17 }
 0x200   :  { %v109_v27 = vmul.f32 %v885_v21, %v98_v22  ;;  %v110_v28 = vmul.f32 %v885_v21, %v99_v23  ;;  %v111_v29 = vmul.f32 %v885_v21, %v100_v24  ;;  %v112_v30 = vmul.f32 %v885_v21, %v101_v25  ;;  %v1109_v23 = vld [vmem:[%s1468_s2 + $0x40] sm:$0xff]   ;;  %v1111_v25 = vld [vmem:[%s1468_s2 + $0x48] sm:$0xff]  }
 0x201   :  { %v1110_v24 = vld [vmem:[%s1468_s2] sm:$0xff]   ;;  %1002 = vmatprep.subr.bf16.mxu0 %v1109_v23 }
 0x202   :  { %v120_v31 = vadd.f32 %v886_v26, %v109_v27  ;;  %v121_v32 = vadd.f32 %v886_v26, %v110_v28  ;;  %v122_v33 = vadd.f32 %v886_v26, %v111_v29  ;;  %v123_v34 = vadd.f32 %v886_v26, %v112_v30  ;;  %v1112_v26 = vld [vmem:[%s1468_s2 + $0x8] sm:$0xff]   ;;  %v1113_v27 = vld [vmem:[%s1468_s2 + $0x50] sm:$0xff]   ;;  %v1114_v28 = vld [vmem:[%s1468_s2 + $0x80] sm:$0xff]  }
 0x203   :  { %v1115_v29 = vld [vmem:[%s1468_s2 + $0x10] sm:$0xff]   ;;  %1060 = vmatprep.subr.bf16.mxu1 %v1114_v28  ;;  %v1116_v30 = vld [vmem:[%s1468_s2 + $0x58] sm:$0xff]  }
 0x204   :  { %v124_v35 = vmax.f32 %v120_v31, 0.0  ;;  %v125_v36 = vmax.f32 %v121_v32, 0.0  ;;  %v126_v37 = vmax.f32 %v122_v33, 0.0  ;;  %v127_v38 = vmax.f32 %v123_v34, 0.0  ;;  %v1117_v31 = vld [vmem:[%s1468_s2 + $0x88] sm:$0xff]   ;;  %v1118_v32 = vld [vmem:[%s1468_s2 + $0x18] sm:$0xff]  }
 0x205   :  { %v1119_v33 = vld [vmem:[%s1468_s2 + $0x60] sm:$0xff]   ;;  %v1120_v34 = vld [vmem:[%s1468_s2 + $0x90] sm:$0xff]  }
 0x206   :  { %v133_v39 = vrot.slane %v124_v35, 7  ;;  %v134_v40 = vrot.slane %v125_v36, 7  ;;  %v159_v41 = vpack.c.bf16 %v125_v36, %v124_v35  ;;  %v146_v42 = vrot.slane %v124_v35, 1  ;;  %v1121_v35 = vld [vmem:[%s1468_s2 + $0x20] sm:$0xff]  }
 0x207   :  { %v147_v43 = vrot.slane %v125_v36, 1  ;;  %v149_v44 = vrot.slane %v126_v37, 1  ;;  %v150_v45 = vrot.slane %v127_v38, 1  ;;  %v162_v51 = vpack.c.bf16 %v127_v38, %v126_v37  ;;  %v1122_v36 = vld [vmem:[%s1468_s2 + $0x68] sm:$0xff]  }
 0x208   :  { %388 = vmatprep.mubr.bf16.mxu0 %v159_v41  ;;  %v135_v46 = vsel %vm132_vm0, %v133_v39, %v134_v40  ;;  %v136_v55 = vrot.slane %v126_v37, 7  ;;  %v137_v56 = vrot.slane %v127_v38, 7  ;;  %v1123_v37 = vld [vmem:[%s1468_s2 + $0x98] sm:$0xff]   ;;  %v1124_v38 = vld [vmem:[%s1468_s2 + $0x28] sm:$0xff]   ;;  %v1126_v40 = vld [vmem:[%s1468_s2 + $0xa0] sm:$0xff]  }
 0x209   :  { %v913_v48 = vpack.c.bf16 %v135_v46, %v133_v39  ;;  %v148_v49 = vsel %vm145_vm2, %v146_v42, %v147_v43  ;;  %v151_v52 = vsel %vm145_vm2, %v149_v44, %v150_v45  ;;  %v1125_v39 = vld [vmem:[%s1468_s2 + $0x70] sm:$0xff]   ;;  %v1128_v42 = vld [vmem:[%s1468_s2 + $0x78] sm:$0xff]  }
 0x20a   :  { %v920_v53 = vpack.c.bf16 %v147_v43, %v148_v49  ;;  %v923_v54 = vpack.c.bf16 %v150_v45, %v151_v52  ;;  %v138_v57 = vsel %vm132_vm0, %v136_v55, %v137_v56  ;;  %v1127_v41 = vld [vmem:[%s1468_s2 + $0x30] sm:$0xff]   ;;  %v1129_v43 = vld [vmem:[%s1468_s2 + $0xa8] sm:$0xff]   ;;  %v1130_v44 = vld [vmem:[%s1468_s2 + $0x38] sm:$0xff]  }
 0x20b   :  { %914 = vmatmul.mubr.msk.bf16.vlgmr.msra.gmra.mrb[0].mxu0 %vm1305_vm4, %v913_v48  ;;  %v917_v58 = vpack.c.bf16 %v138_v57, %v136_v55  ;;  %v1131_v45 = vld [vmem:[%s1468_s2 + $0xb0] sm:$0xff]   ;;  %v1132_v46 = vld [vmem:[%s1468_s2 + $0xb8] sm:$0xff]  }
 0x20c   :  { %1056 = vmatprep.mubr.msk.bf16.mxu1 %vm1311_vm5, %v920_v53  ;;  %396 = vmatprep.mubr.bf16.mxu0 %v162_v51 }
 0x20d   :  { %1057 = vmatmul.mubr.msk.bf16.vlgmr.msra.gmra.mrb[0].mxu1 %vm1311_vm5, %v923_v54  ;;  %1003 = vmatpush3.bf16.msra.mxu0 %v1110_v24 }
 0x20e   :  { %1004 = vmatprep.subr.bf16.mxu0 %v1111_v25  ;;  %1061 = vmatpush3.bf16.msra.mxu1 %v1114_v28 }
 0x20f   :  { %1062 = vmatprep.subr.bf16.mxu1 %v1117_v31 }
 0x211   :  { %1005 = vmatpush3.bf16.msra.mxu0 %v1112_v26 }
 0x212   :  { %1006 = vmatprep.subr.bf16.mxu0 %v1113_v27  ;;  %1063 = vmatpush3.bf16.msra.mxu1 %v1117_v31 }
 0x213   :  { %918 = vmatmul.mubr.msk.bf16.gmra.mrb[4].mxu0 %vm1305_vm4, %v917_v58  ;;  %1064 = vmatprep.subr.bf16.mxu1 %v1120_v34 }
 0x215   :  { %1007 = vmatpush3.bf16.msra.mxu0 %v1115_v29 }
 0x216   :  { %1008 = vmatprep.subr.bf16.mxu0 %v1116_v30  ;;  %1065 = vmatpush3.bf16.msra.mxu1 %v1120_v34 }
 0x217   :  { %1066 = vmatprep.subr.bf16.mxu1 %v1123_v37 }
 0x219   :  { %1009 = vmatpush3.bf16.msra.mxu0 %v1118_v32 }
 0x21a   :  { %1010 = vmatprep.subr.bf16.mxu0 %v1119_v33  ;;  %1067 = vmatpush3.bf16.msra.mxu1 %v1123_v37 }
 0x21b   :  { %1068 = vmatprep.subr.bf16.mxu1 %v1126_v40 }
 0x21d   :  { %1011 = vmatpush3.bf16.msra.mxu0 %v1121_v35 }
 0x21e   :  { %1012 = vmatprep.subr.bf16.mxu0 %v1122_v36  ;;  %1069 = vmatpush3.bf16.msra.mxu1 %v1126_v40 }
 0x21f   :  { %1070 = vmatprep.subr.bf16.mxu1 %v1129_v43 }
 0x221   :  { %1013 = vmatpush3.bf16.msra.mxu0 %v1124_v38 }
 0x222   :  { %1014 = vmatprep.subr.bf16.mxu0 %v1125_v39  ;;  %1071 = vmatpush3.bf16.msra.mxu1 %v1129_v43  ;;  %v523_v43 = vld [vmem:[%s1469_s5 + $0x8] sm:$0xff] }
 0x223   :  { %1072 = vmatprep.subr.bf16.mxu1 %v1131_v45 }
 0x225   :  { %1015 = vmatpush3.bf16.msra.mxu0 %v1127_v41 }
 0x226   :  { %1016 = vmatprep.subr.bf16.mxu0 %v1128_v42  ;;  %1073 = vmatpush3.bf16.msra.mxu1 %v1131_v45  ;;  %v522_v42 = vld [vmem:[%s1469_s5] sm:$0xff] }
 0x227   :  { %1074 = vmatprep.subr.bf16.mxu1 %v1132_v46 }
 0x229   :  { %1017 = vmatpush3.bf16.msra.mxu0 %v1130_v44 }
 0x22a   :  { %1075 = vmatpush3.bf16.msra.mxu1 %v1132_v46  ;;  %v528_v46 = vld [vmem:[%s1470_s6] sm:$0xff] }
 0x2de   :  { %v980_v59 = vpop.f32.mrb[0].mxu0 }
 0x2df   :  { %v981_v60 = vpop.f32.mrb[1].mxu0 }
 0x2e0   :  { %v982_v61 = vadd.f32 %v981_v60, %v980_v59  ;;  %v1058_v62 = vpop.f32.mrb[0].mxu1  ;;  %v983_v63 = vpop.f32.mrb[2].mxu0 }
 0x2e1   :  { %v439_v4 = vpop.f32.mrb[1].mxu1  ;;  %v984_v5 = vpop.f32.mrb[3].mxu0 }
 0x2e2   :  { %v1325_v6 = vadd.f32 %v982_v61, %v439_v4  ;;  %v985_v7 = vadd.f32 %v984_v5, %v983_v63  ;;  %v1059_v8 = vpop.f32.mrb[2].mxu1 }
 0x2e3   :  { %v442_v9 = vpop.f32.mrb[3].mxu1 }
 0x2e4   :  { %v1327_v10 = vadd.f32 %v985_v7, %v442_v9  ;;  %454 = vadd.xlane.f32.xlu0 %v1325_v6  ;;  %v476_v12 = vmul.f32 %v1325_v6, %v1325_v6 }
 0x2e6   :  { %v986_v11 = vpop.f32.mrb[4].mxu0  ;;  %456 = vadd.xlane.f32.xlu1 %v1327_v10  ;;  %v477_v19 = vmul.f32 %v1327_v10, %v1327_v10 }
 0x2e7   :  { %v987_v13 = vpop.f32.mrb[5].mxu0 }
 0x2e8   :  { %v988_v14 = vadd.f32 %v987_v13, %v986_v11  ;;  %v989_v15 = vpop.f32.mrb[6].mxu0  ;;  %480 = vadd.xlane.f32.xlu0 %v476_v12 }
 0x2e9   :  { %v990_v16 = vpop.f32.mrb[7].mxu0 }
 0x2ea   :  { %v1333_v17 = vadd.f32 %v1058_v62, %v988_v14  ;;  %v991_v18 = vadd.f32 %v990_v16, %v989_v15 }
 0x2ec   :  { %v1337_v20 = vadd.f32 %v1059_v8, %v991_v18  ;;  %458 = vadd.xlane.f32.xlu1 %v1333_v17  ;;  %482 = vadd.xlane.f32.xlu0 %v477_v19  ;;  %v478_v21 = vmul.f32 %v1333_v17, %v1333_v17 }
 0x2ee   :  { %v479_v22 = vmul.f32 %v1337_v20, %v1337_v20 }
 0x2f0   :  { %484 = vadd.xlane.f32.xlu1 %v478_v21  ;;  %460 = vadd.xlane.f32.xlu0 %v1337_v20 }
 0x2f4   :  { %486 = vadd.xlane.f32.xlu0 %v479_v22 }
 0x371   :  { %v455_v48 = vpop.xlane.xlu0 %454 }
 0x373   :  { %v457_v49 = vpop.xlane.xlu1 %456 }
 0x374   :  { %v462_v51 = vadd.f32 %v457_v49, %v455_v48 }
 0x375   :  { %v481_v52 = vpop.xlane.xlu0 %480 }
 0x376   :  { %v463_v53 = vrot.slane %v462_v51, 4 }
 0x378   :  { %v464_v54 = vadd.f32 %v463_v53, %v462_v51 }
 0x379   :  { %v483_v55 = vpop.xlane.xlu0 %482  ;;  %v459_v58 = vpop.xlane.xlu1 %458 }
 0x37a   :  { %v465_v56 = vrot.slane %v464_v54, 2  ;;  %v488_v57 = vadd.f32 %v483_v55, %v481_v52 }
 0x37c   :  { %v466_v59 = vadd.f32 %v465_v56, %v464_v54  ;;  %v489_v60 = vrot.slane %v488_v57, 4 }
 0x37d   :  { %v461_v61 = vpop.xlane.xlu0 %460  ;;  %v485_v9 = vpop.xlane.xlu1 %484 }
 0x37e   :  { %v467_v62 = vrot.slane %v466_v59, 1  ;;  %v490_v63 = vadd.f32 %v489_v60, %v488_v57  ;;  %v469_v4 = vadd.f32 %v461_v61, %v459_v58 }
 0x380   :  { %v468_v5 = vadd.f32 %v467_v62, %v466_v59  ;;  %v491_v7 = vrot.slane %v490_v63, 2  ;;  %v470_v8 = vrot.slane %v469_v4, 4 }
 0x381   :  { %v487_v11 = vpop.xlane.xlu0 %486 }
 0x382   :  { %v492_v12 = vadd.f32 %v491_v7, %v490_v63  ;;  %v471_v13 = vadd.f32 %v470_v8, %v469_v4  ;;  %v495_v14 = vadd.f32 %v487_v11, %v485_v9  ;;  %v502_v15 = vmul.f32 0.00048828125, %v468_v5 }
 0x384   :  { %v493_v16 = vrot.slane %v492_v12, 1  ;;  %v472_v18 = vrot.slane %v471_v13, 2  ;;  %v496_v19 = vrot.slane %v495_v14, 4  ;;  %v506_v24 = vmul.f32 %v502_v15, %v502_v15 }
 0x385   :  { %v510_v39 = vsub.f32 %v1325_v6, %v502_v15  ;;  %v511_v40 = vsub.f32 %v1327_v10, %v502_v15  ;;  %v529_v6 = vld [vmem:[%s1470_s6 + $0x8] sm:$0xff] }
 0x386   :  { %v494_v21 = vadd.f32 %v493_v16, %v492_v12  ;;  %v473_v22 = vadd.f32 %v472_v18, %v471_v13  ;;  %v497_v23 = vadd.f32 %v496_v19, %v495_v14 }
 0x388   :  { %v504_v25 = vmul.f32 0.00048828125, %v494_v21  ;;  %v474_v26 = vrot.slane %v473_v22, 1  ;;  %v498_v27 = vrot.slane %v497_v23, 2 }
 0x38a   :  { %v508_v28 = vsub.f32 %v504_v25, %v506_v24  ;;  %v475_v29 = vadd.f32 %v474_v26, %v473_v22  ;;  %v499_v30 = vadd.f32 %v498_v27, %v497_v23 }
 0x38c   :  { %v514_v31 = vadd.f32 1e-05, %v508_v28  ;;  %v503_v32 = vmul.f32 0.00048828125, %v475_v29  ;;  %v500_v33 = vrot.slane %v499_v30, 1 }
 0x38e   :  { %1135 = vrsqrt.f32 %v514_v31  ;;  %v501_v34 = vadd.f32 %v500_v33, %v499_v30  ;;  %v507_v35 = vmul.f32 %v503_v32, %v503_v32  ;;  %v512_v54 = vsub.f32 %v1333_v17, %v503_v32  ;;  %v963_v33 = vld [vmem:[%s1471_s7] ss:$0 sm:$0xff] }
 0x38f   :  { %v513_v55 = vsub.f32 %v1337_v20, %v503_v32 }
 0x390   :  { %v505_v36 = vmul.f32 0.00048828125, %v501_v34 }
 0x392   :  { %v509_v37 = vsub.f32 %v505_v36, %v507_v35 }
 0x394   :  { %v515_v38 = vadd.f32 1e-05, %v509_v37 }
 0x396   :  { %1137 = vrsqrt.f32 %v515_v38 }
 0x398   :  { %v1136_v41 = vpop.eup %1135 }
 0x399   :  { %v518_v44 = vmul.f32 %v1136_v41, %v510_v39  ;;  %v519_v45 = vmul.f32 %v1136_v41, %v511_v40 }
 0x39b   :  { %v524_v10 = vmul.f32 %v522_v42, %v518_v44  ;;  %v525_v48 = vmul.f32 %v523_v43, %v519_v45 }
 0x39d   :  { %v530_v49 = vadd.f32 %v528_v46, %v524_v10  ;;  %v531_v51 = vadd.f32 %v529_v6, %v525_v48 }
 0x39f   :  { %v534_v52 = vmax.f32 %v530_v49, 0.0  ;;  %v535_v53 = vmax.f32 %v531_v51, 0.0 }
 0x3a0   :  { %v1138_v56 = vpop.eup %1137 }
 0x3a1   :  { %v542_v57 = vrot.slane %v534_v52, 7  ;;  %v543_v58 = vrot.slane %v535_v53, 7  ;;  %v567_v59 = vpack.c.bf16 %v535_v53, %v534_v52  ;;  %v554_v60 = vrot.slane %v534_v52, 1 }
 0x3a2   :  { %v555_v61 = vrot.slane %v535_v53, 1  ;;  %v520_v62 = vmul.f32 %v1138_v56, %v512_v54  ;;  %v521_v63 = vmul.f32 %v1138_v56, %v513_v55 }
 0x3a3   :  { %v544_v4 = vsel %vm132_vm0, %v542_v57, %v543_v58  ;;  %796 = vmatprep.mubr.bf16.mxu0 %v567_v59 }
 0x3a4   :  { %v951_v5 = vpack.c.bf16 %v544_v4, %v542_v57  ;;  %v556_v7 = vsel %vm145_vm2, %v554_v60, %v555_v61  ;;  %v526_v8 = vmul.f32 %v522_v42, %v520_v62  ;;  %v527_v9 = vmul.f32 %v523_v43, %v521_v63 }
 0x3a5   :  { %v958_v11 = vpack.c.bf16 %v555_v61, %v556_v7 }
 0x3a6   :  { %952 = vmatmul.mubr.msk.bf16.vlgmr.msra.gmra.mrb[8].mxu0 %vm1305_vm4, %v951_v5  ;;  %v532_v17 = vadd.f32 %v528_v46, %v526_v8  ;;  %v533_v20 = vadd.f32 %v529_v6, %v527_v9 }
 0x3a7   :  { %1076 = vmatprep.mubr.msk.bf16.mxu1 %vm1311_vm5, %v958_v11 }
 0x3a8   :  { %v536_v12 = vmax.f32 %v532_v17, 0.0  ;;  %v537_v13 = vmax.f32 %v533_v20, 0.0 }
 0x3aa   :  { %v557_v14 = vrot.slane %v536_v12, 1  ;;  %v558_v15 = vrot.slane %v537_v13, 1  ;;  %v570_v16 = vpack.c.bf16 %v537_v13, %v536_v12  ;;  %v545_v18 = vrot.slane %v536_v12, 7 }
 0x3ab   :  { %v546_v19 = vrot.slane %v537_v13, 7 }
 0x3ac   :  { %804 = vmatprep.mubr.bf16.mxu0 %v570_v16  ;;  %v559_v21 = vsel %vm145_vm2, %v557_v14, %v558_v15 }
 0x3ad   :  { %v547_v22 = vsel %vm132_vm0, %v545_v18, %v546_v19  ;;  %v961_v23 = vpack.c.bf16 %v558_v15, %v559_v21 }
 0x3ae   :  { %v955_v24 = vpack.c.bf16 %v547_v22, %v545_v18 }
 0x3af   :  { %1077 = vmatmul.mubr.msk.bf16.vlgmr.msra.gmra.mrb[4].mxu1 %vm1311_vm5, %v961_v23 }
 0x3b0   :  { %956 = vmatmul.mubr.msk.bf16.gmra.mrb[12].mxu0 %vm1305_vm4, %v955_v24 }
 0x479   :  { %v1018_v25 = vpop.f32.mrb[8].mxu0 }
 0x47a   :  { %v1019_v26 = vpop.f32.mrb[9].mxu0 }
 0x47b   :  { %v1020_v27 = vadd.f32 %v1019_v26, %v1018_v25  ;;  %v1021_v28 = vpop.f32.mrb[10].mxu0 }
 0x47c   :  { %v1022_v29 = vpop.f32.mrb[11].mxu0 }
 0x47d   :  { %v1023_v30 = vadd.f32 %v1022_v29, %v1021_v28 }
 0x482   :  { %v1078_v31 = vpop.f32.mrb[4].mxu1 }
 0x483   :  { %v1024_v32 = vpop.f32.mrb[12].mxu0  ;;  %v847_v34 = vpop.f32.mrb[5].mxu1 }
 0x484   :  { %v1025_v35 = vpop.f32.mrb[13].mxu0  ;;  %v848_v36 = vadd.f32 %v1020_v27, %v847_v34  ;;  %v1079_v50 = vpop.f32.mrb[6].mxu1 }
 0x485   :  { %v1026_v37 = vadd.f32 %v1025_v35, %v1024_v32  ;;  %v1027_v38 = vpop.f32.mrb[14].mxu0  ;;  %v850_v47 = vpop.f32.mrb[7].mxu1 }
 0x486   :  { %v869_v39 = vadd.f32 %v963_v33, %v848_v36  ;;  %v1028_v40 = vpop.f32.mrb[15].mxu0  ;;  %v851_v41 = vadd.f32 %v1023_v30, %v850_v47 }
 0x487   :  { %v856_v42 = vadd.f32 %v1078_v31, %v1026_v37  ;;  %v1029_v43 = vadd.f32 %v1028_v40, %v1027_v38 }
 0x488   :  { %v873_v44 = vadd.f32 %v869_v39, %v1192_v0  ;;  %v870_v45 = vadd.f32 %v963_v33, %v851_v41 }
 0x489   :  { %v871_v46 = vadd.f32 %v963_v33, %v856_v42  ;;  %v859_v6 = vadd.f32 %v1079_v50, %v1029_v43 }
 0x48a   :  { %877 = vst [vmem:[%s1472_s8] sm:$0xff] %v873_v44  ;;  %v874_v10 = vadd.f32 %v870_v45, %v1197_v1 }
 0x48b   :  { %v875_v48 = vadd.f32 %v871_v46, %v1202_v2  ;;  %v872_v49 = vadd.f32 %v963_v33, %v859_v6 }
 0x48c   :  { %878 = vst [vmem:[%s1472_s8 + $0x8] sm:$0xff] %v874_v10 }
 0x48d   :  { %879 = vst [vmem:[%s1472_s8 + $0x10] sm:$0xff] %v875_v48  ;;  %v876_v0 = vadd.f32 %v872_v49, %v1207_v3 }
 0x48f   :  { %880 = vst [vmem:[%s1472_s8 + $0x18] sm:$0xff] %v876_v0 }

</bundles_post_ra>
